<compile_context>
chip_gen: v7x
topology: tpu7x:2x2x1
jax: 0.10.0
libtpu: 0.0.40
codegen_flags: <defaults>
</compile_context>

<pallas_src>
import functools

import jax
import jax.numpy as jnp
from jax import lax
from jax.experimental import pallas as pl
from jax.experimental.pallas import tpu as pltpu


def _row_softmax(x):
    m = jnp.max(x, axis=1, keepdims=True)
    e = jnp.exp(x - m)
    # approx reciprocal -> EUP slot; the row scale is shared so argmax is unchanged.
    return e * pl.reciprocal(jnp.sum(e, axis=1, keepdims=True), approx=True)


def _onehot_argmax(p):
    # one-hot of row-wise argmax (deterministic first-max tie break)
    r, c = p.shape
    col = lax.broadcasted_iota(jnp.int32, (r, c), 1)
    maxv = jnp.max(p, axis=1, keepdims=True)
    cand = jnp.where(p == maxv, col, c)
    first = jnp.min(cand, axis=1, keepdims=True)
    return (col == first).astype(p.dtype)


def _degree_kernel(a_ref, d_ref):
    # d = rsqrt(deg + 1) with deg = row sums of A (A symmetric -> row == col sums,
    # matching GCNConv's symmetric normalization with self loops).
    deg = jnp.sum(a_ref[...].astype(jnp.float32), axis=1, keepdims=True) + 1.0
    d_ref[...] = lax.rsqrt(deg)


def _pool_kernel(x_ref, w_ref, b_ref, d_ref, z_ref, y_ref, a_ref,
                 st_ref, xnew_ref, anew_ref, ynew_ref, yprob_ref,
                 xw_scr, s_scr, acc_t, acc_x, acc_sy, *, sparse, tn):
    f32 = jnp.float32
    bf16 = jnp.bfloat16
    k = pl.program_id(0)
    nb = pl.num_programs(0)

    @pl.when(k == 0)
    def _init():
        # Feature transform, pre-scaled once by D^-1/2 (the "column" scaling).
        xw = jnp.dot(x_ref[...], w_ref[...], preferred_element_type=f32)
        xw_scr[...] = d_ref[...] * xw                       # (N, H) f32, resident
        acc_t[...] = jnp.zeros_like(acc_t)                  # S^T A accumulator
        acc_x[...] = jnp.zeros_like(acc_x)                  # S^T Z accumulator
        acc_sy[...] = jnp.zeros_like(acc_sy)                # S^T Y accumulator

    row0 = pl.multiple_of(k * tn, tn)
    a_blk = a_ref[...]                                      # (TN, N) bf16

    # GCN propagation for this row block:
    #   h = d_blk * (A_blk @ (d .* XW) + (d .* XW)_blk) + b
    prop = jnp.dot(a_blk, xw_scr[...].astype(bf16), preferred_element_type=f32)
    xw_blk = xw_scr[pl.ds(row0, tn), :]
    d_blk = d_ref[pl.ds(row0, tn), :]
    h = d_blk * (prop + xw_blk) + b_ref[...]
    h = jnp.maximum(h, 0.0)                                 # relu
    s_blk = _row_softmax(h)                                 # softmax(dim=1), (TN, H)
    if sparse:                                              # self.sparse branch
        s_blk = _onehot_argmax(s_blk)

    s_scr[pl.ds(row0, tn), :] = s_blk                       # keep full S for finalize
    st = s_blk.T                                            # (H, TN): one XLU transpose
    st_ref[...] = st                                        # lane-dense S^T output block

    # Pooling contractions as plain matmuls (LHS already transposed).
    acc_x[...] += jnp.dot(st, z_ref[...], preferred_element_type=f32)       # S^T Z
    acc_sy[...] += jnp.dot(st, y_ref[...], preferred_element_type=f32)      # S^T Y
    acc_t[...] += jnp.dot(st.astype(bf16), a_blk, preferred_element_type=f32)  # S^T A

    @pl.when(k == nb - 1)
    def _finalize():
        xnew_ref[...] = acc_x[...]                          # X_new (H, Dz)
        yp = _row_softmax(acc_sy[...])                      # softmax(dim=1)
        yprob_ref[...] = yp                                 # Y_new_prob (H, C)
        ynew_ref[...] = _onehot_argmax(yp)                  # Y_new (H, C)
        anew_ref[...] = jnp.dot(acc_t[...], s_scr[...],     # A_new = (S^T A) S
                                preferred_element_type=f32)
    # TODO(synk): the `use_sparse=True` spmm(edge_index, edge_weight) branch is
    # not implemented; the dense S^T A S path above is its dense equivalent.


def _pick_row_block(n):
    # Prefer lane-aligned row blocks; fall back to the whole array when N is not
    # a multiple of 128.
    for tn in (512, 256, 128):
        if n % tn == 0:
            return tn
    # TODO(synk): pad N to a multiple of 128 for very large, oddly-sized graphs.
    return n


def gcn_pooling_forward(x_old, a_old, y_old, z, w, b, *, sparse=False):
    n, din = x_old.shape
    h = w.shape[1]
    dz = z.shape[1]
    c = y_old.shape[1]
    tn = _pick_row_block(n)
    nb = n // tn
    f32 = jnp.float32

    # A is the dominant HBM/VMEM consumer: keep it in bf16 end-to-end.
    a_bf16 = a_old.astype(jnp.bfloat16)

    # Pass 1: degree scaling d = rsqrt(rowsum(A) + 1), streamed over row blocks.
    d = pl.pallas_call(
        _degree_kernel,
        out_shape=jax.ShapeDtypeStruct((n, 1), f32),
        grid=(nb,),
        in_specs=[pl.BlockSpec((tn, n), lambda k: (k, 0))],
        out_specs=pl.BlockSpec((tn, 1), lambda k: (k, 0)),
        compiler_params=pltpu.CompilerParams(dimension_semantics=("parallel",)),
    )(a_bf16)

    # Pass 2: propagation + pooling, streamed over the same row blocks.
    out_shape = (
        jax.ShapeDtypeStruct((h, n), f32),    # S^T  (lane-dense)
        jax.ShapeDtypeStruct((h, dz), f32),   # X_new
        jax.ShapeDtypeStruct((h, h), f32),    # A_new
        jax.ShapeDtypeStruct((h, c), f32),    # Y_new
        jax.ShapeDtypeStruct((h, c), f32),    # Y_new_prob
    )
    st, x_new, a_new, y_new, y_new_prob = pl.pallas_call(
        functools.partial(_pool_kernel, sparse=sparse, tn=tn),
        out_shape=out_shape,
        grid_spec=pltpu.PrefetchScalarGridSpec(
            num_scalar_prefetch=0,
            grid=(nb,),
            in_specs=[
                pl.BlockSpec((n, din), lambda k: (0, 0)),   # X   (resident)
                pl.BlockSpec((din, h), lambda k: (0, 0)),   # W   (resident)
                pl.BlockSpec((1, h), lambda k: (0, 0)),     # b   (resident)
                pl.BlockSpec((n, 1), lambda k: (0, 0)),     # d   (resident)
                pl.BlockSpec((tn, dz), lambda k: (k, 0)),   # Z   row block
                pl.BlockSpec((tn, c), lambda k: (k, 0)),    # Y   row block
                pl.BlockSpec((tn, n), lambda k: (k, 0)),    # A   row block (bf16)
            ],
            out_specs=(
                pl.BlockSpec((h, tn), lambda k: (0, k)),    # S^T blocks
                pl.BlockSpec((h, dz), lambda k: (0, 0)),
                pl.BlockSpec((h, h), lambda k: (0, 0)),
                pl.BlockSpec((h, c), lambda k: (0, 0)),
                pl.BlockSpec((h, c), lambda k: (0, 0)),
            ),
            scratch_shapes=[
                pltpu.VMEM((n, h), f32),     # d .* (X W), resident across blocks
                pltpu.VMEM((n, h), f32),     # full S in (N, H) layout (for A_new)
                pltpu.VMEM((h, n), f32),     # acc: S^T A
                pltpu.VMEM((h, dz), f32),    # acc: S^T Z
                pltpu.VMEM((h, c), f32),     # acc: S^T Y
            ],
        ),
        compiler_params=pltpu.CompilerParams(dimension_semantics=("arbitrary",)),
    )(x_old.astype(f32), w.astype(f32), b.reshape(1, -1).astype(f32), d,
      z.astype(f32), y_old.astype(f32), a_bf16)

    # Module contract returns S as (N, H): one cheap XLA transpose in HBM.
    return st.T, x_new, a_new, y_new, y_new_prob


if __name__ == "__main__":
    # Small shapes implied by the module: N nodes, in_dim features,
    # hid_dim pooled nodes, n_class labels, Z embedding dim.
    N, D_IN, HID, D_Z, N_CLASS = 64, 16, 8, 16, 4

    key = jax.random.PRNGKey(0)
    k_x, k_a, k_y, k_z, k_w, k_b = jax.random.split(key, 6)

    x_old = jax.random.normal(k_x, (N, D_IN), dtype=jnp.float32)

    # symmetric non-negative dense adjacency, zero diagonal (GCNConv adds self loops)
    raw = jax.random.uniform(k_a, (N, N), dtype=jnp.float32)
    a_sym = 0.5 * (raw + raw.T)
    a_old = a_sym * (1.0 - jnp.eye(N, dtype=jnp.float32))

    labels = jax.random.randint(k_y, (N,), 0, N_CLASS)
    y_old = jax.nn.one_hot(labels, N_CLASS, dtype=jnp.float32)

    z = jax.random.normal(k_z, (N, D_Z), dtype=jnp.float32)

    # GCNConv parameters (weight [in_dim, hid_dim], bias [hid_dim])
    w = jax.random.normal(k_w, (D_IN, HID), dtype=jnp.float32) * 0.1
    b = jax.random.normal(k_b, (HID,), dtype=jnp.float32) * 0.01

    outs = gcn_pooling_forward(x_old, a_old, y_old, z, w, b, sparse=False)
    outs = jax.block_until_ready(outs)
    S, X_new, A_new, Y_new, Y_new_prob = outs
    assert S.shape == (N, HID)
    assert X_new.shape == (HID, D_Z)
    assert A_new.shape == (HID, HID)
    assert Y_new.shape == (HID, N_CLASS)
    assert Y_new_prob.shape == (HID, N_CLASS)

    # Numerical sanity: S rows and Y_new_prob rows are (approx) prob. dists,
    # Y_new rows are exact one-hots, everything finite.
    for t in outs:
        assert bool(jnp.all(jnp.isfinite(t)))
    assert bool(jnp.all(jnp.abs(jnp.sum(S, axis=1) - 1.0) < 1e-2))
    assert bool(jnp.all(jnp.abs(jnp.sum(Y_new_prob, axis=1) - 1.0) < 1e-2))
    assert bool(jnp.all(jnp.sum(Y_new, axis=1) == 1.0))

    # Exercise the sparse-assignment branch once as well.
    outs_sp = gcn_pooling_forward(x_old, a_old, y_old, z, w, b, sparse=True)
    outs_sp = jax.block_until_ready(outs_sp)
    S_sp = outs_sp[0]
    assert bool(jnp.all(jnp.sum(S_sp, axis=1) == 1.0))  # one-hot rows

    print("KERNEL_OK")
</pallas_src>

<mosaic_0001>
module attributes {stable_mosaic.version = 11 : i64} {
  func.func @_degree_kernel(%arg0: i32, %arg1: memref<64x64xbf16, #tpu.memory_space<vmem>>, %arg2: memref<64x1xf32, #tpu.memory_space<vmem>>) attributes {dimension_semantics = [#tpu.dimension_semantics<parallel>], iteration_bounds = array<i64: 1>, scalar_prefetch = 0 : i64, scratch_operands = 0 : i64, tpu.core_type = #tpu.core_type<tc>, window_params = [{transform_indices = @transform_0, window_bounds = array<i64: 64, 64>}, {transform_indices = @transform_1, window_bounds = array<i64: 64, 1>}]} {
    %c0 = arith.constant 0 : index
    %c0_0 = arith.constant 0 : index
    %0 = vector.load %arg1[%c0, %c0_0] : memref<64x64xbf16, #tpu.memory_space<vmem>>, vector<64x64xbf16>
    %1 = arith.extf %0 : vector<64x64xbf16> to vector<64x64xf32>
    %cst = arith.constant dense<0.000000e+00> : vector<64xf32>
    %2 = vector.multi_reduction <add>, %1, %cst [1] : vector<64x64xf32> to vector<64xf32>
    %3 = vector.shape_cast %2 : vector<64xf32> to vector<64x1xf32>
    %cst_1 = arith.constant 1.000000e+00 : f32
    %4 = vector.broadcast %cst_1 : f32 to vector<64x1xf32>
    %5 = arith.addf %3, %4 : vector<64x1xf32>
    %6 = math.rsqrt %5 : vector<64x1xf32>
    %c0_2 = arith.constant 0 : index
    %c0_3 = arith.constant 0 : index
    %7 = vector.load %arg2[%c0_2, %c0_3] : memref<64x1xf32, #tpu.memory_space<vmem>>, vector<64x1xf32>
    tpu.vector_store %arg2[%c0_2, %c0_3], %6 {strides = array<i32>} : memref<64x1xf32, #tpu.memory_space<vmem>>, vector<64x1xf32>,
    return
  }
  func.func @transform_0(%arg0: i32) -> (i32, i32) {
    %c0_i32 = arith.constant 0 : i32
    %c0_i32_0 = arith.constant 0 : i32
    return %arg0, %c0_i32 : i32, i32
  }
  func.func @transform_1(%arg0: i32) -> (i32, i32) {
    %c0_i32 = arith.constant 0 : i32
    %c0_i32_0 = arith.constant 0 : i32
    return %arg0, %c0_i32 : i32, i32
  }
}

</mosaic_0001>

<bundles_post_ra>
// kernel: tpu_custom_call.1
= control target key start
LH: loop header
LB: loop body
LE: loop exit
PB: predicated region body
PF: predicated region fallthrough
CT: control target
= control target key end

     0   :  { %6 = vsyncpa [#allocation3], 0  ;;  %s155_s6 = smov [#allocation2]   ;;  %s220_s0 = inlined_call_operand.hbm [shape: bf16[64,64], index: 0, kind: input, shape index: {}]   ;;  %s221_s1 = inlined_call_operand.vmem [shape: f32[64,1], index: 1, kind: output, shape index: {}]  }
   0x1   :  { %s12_s7 = sshll.u32 %s155_s6, 4  ;;  %s131_s10 = scalar_lea.hbm %s220_s0, 512  ;;  %s13_s7 = int_to_ptr.vmem [resolvable:$true] %s12_s7 }
   0x2   :  { %p132_p0 = scmp.ne.s32.totalorder %s220_s0, %s131_s10  ;;  %p135_p1 = scmp.lt.u32.totalorder %s131_s10, %s220_s0 }
   0x4   :  { %p137_p2 = pnand %p135_p1, %p132_p0 }
   0x6   :  { %140 = shalt.err (!%p137_p2)
}
   0x7   :  { %s141_s15 = scalar_lea.vmem %s13_s7, 512  ;;  %p146_p4 = scmp.lt.s32.totalorder %s13_s7, %s13_s7 }
   0x8   :  { %p142_p3 = scmp.ne.s32.totalorder %s13_s7, %s141_s15  ;;  %p147_p5 = scmp.lt.s32.totalorder %s141_s15, %s141_s15 }
   0xa   :  { %p148_p6 = por %p147_p5, %p146_p4 }
   0xc   :  { %p149_p7 = pnand %p148_p6, %p142_p3 }
   0xe   :  { %152 = shalt.err (!%p149_p7)
}
   0xf   :  { %s156_s16 = smov 64   ;;  %s157_s17 = smov 4  }
  0x10   :  { %18 = dma.hbm_to_vmem [thread:$0]  %s220_s0, 512, %s13_s7, [#allocation3], %s156_s16, %s156_s16, %s157_s17  }
  0x11   :  { %153 = dma.done.wait [#allocation3], 512  }
  0x12   :  { %154 = vsyncadd [#allocation3], 4294966784  ;;  %v109_v0 = vld [vmem:[#allocation2 + $0x8] sm:$0xff]   ;;  %vm38_vm0 = vcmask 523264   ;;  %v94_v1 = vld [vmem:[#allocation2] sm:$0xff]   ;;  %vm79_vm1 = vcmask 7168  }
  0x13   :  { %v99_v2 = vunpack.c.l.bf16 %v109_v0  ;;  %v95_v3 = vunpack.c.l.bf16 %v94_v1  ;;  %v100_v4 = vunpack.c.h.bf16 %v109_v0  ;;  %v96_v5 = vunpack.c.h.bf16 %v94_v1  ;;  %v110_v6 = vld [vmem:[#allocation2 + $0x10] sm:$0xff]   ;;  %v111_v13 = vld [vmem:[#allocation2 + $0x18] sm:$0xff]  }
  0x14   :  { %v104_v11 = vunpack.c.h.bf16 %v110_v6  ;;  %v103_v12 = vunpack.c.l.bf16 %v110_v6  ;;  %v108_v16 = vunpack.c.h.bf16 %v111_v13  ;;  %v107_v17 = vunpack.c.l.bf16 %v111_v13 }
  0x15   :  { %v45_v7 = vsel %vm38_vm0, %v99_v2, 0.0  ;;  %v39_v8 = vsel %vm38_vm0, %v95_v3, 0.0  ;;  %v48_v9 = vsel %vm38_vm0, %v100_v4, 0.0  ;;  %v42_v10 = vsel %vm38_vm0, %v96_v5, 0.0 }
  0x16   :  { %46 = vadd.xlane.f32.xlu1 %v45_v7  ;;  %40 = vadd.xlane.f32.xlu0 %v39_v8  ;;  %v54_v14 = vsel %vm38_vm0, %v104_v11, 0.0  ;;  %v51_v15 = vsel %vm38_vm0, %v103_v12, 0.0  ;;  %v60_v18 = vsel %vm38_vm0, %v108_v16, 0.0  ;;  %v57_v19 = vsel %vm38_vm0, %v107_v17, 0.0 }
  0x1a   :  { %49 = vadd.xlane.f32.xlu1 %v48_v9  ;;  %43 = vadd.xlane.f32.xlu0 %v42_v10 }
  0x1e   :  { %55 = vadd.xlane.f32.xlu1 %v54_v14  ;;  %52 = vadd.xlane.f32.xlu0 %v51_v15 }
  0x22   :  { %61 = vadd.xlane.f32.xlu1 %v60_v18  ;;  %58 = vadd.xlane.f32.xlu0 %v57_v19 }
  0xa3   :  { %v47_v20 = vpop.xlane.xlu1 %46  ;;  %v41_v21 = vpop.xlane.xlu0 %40 }
  0xa4   :  { %v65_v22 = vadd.f32 1.0, %v47_v20  ;;  %v63_v23 = vadd.f32 1.0, %v41_v21 }
  0xa6   :  { %115 = vrsqrt.f32 %v65_v22 }
  0xa7   :  { %117 = vrsqrt.f32 %v63_v23  ;;  %v50_v24 = vpop.xlane.xlu1 %49  ;;  %v44_v25 = vpop.xlane.xlu0 %43 }
  0xa8   :  { %v66_v26 = vadd.f32 1.0, %v50_v24  ;;  %v64_v27 = vadd.f32 1.0, %v44_v25 }
  0xaa   :  { %119 = vrsqrt.f32 %v66_v26 }
  0xab   :  { %121 = vrsqrt.f32 %v64_v27  ;;  %v56_v28 = vpop.xlane.xlu1 %55  ;;  %v53_v29 = vpop.xlane.xlu0 %52 }
  0xac   :  { %v68_v30 = vadd.f32 1.0, %v56_v28  ;;  %v67_v31 = vadd.f32 1.0, %v53_v29 }
  0xae   :  { %123 = vrsqrt.f32 %v68_v30 }
  0xaf   :  { %125 = vrsqrt.f32 %v67_v31  ;;  %v62_v32 = vpop.xlane.xlu1 %61  ;;  %v59_v33 = vpop.xlane.xlu0 %58 }
  0xb0   :  { %v116_v34 = vpop.eup %115  ;;  %v70_v35 = vadd.f32 1.0, %v62_v32  ;;  %v69_v36 = vadd.f32 1.0, %v59_v33 }
  0xb1   :  { %v118_v37 = vpop.eup %117  ;;  %82 = vst.msk [vmem:[%s221_s1 + $0x10] sm:$0xff] %vm79_vm1, %v116_v34 }
  0xb2   :  { %80 = vst.msk [vmem:[%s221_s1] sm:$0xff] %vm79_vm1, %v118_v37  ;;  %127 = vrsqrt.f32 %v70_v35 }
  0xb3   :  { %129 = vrsqrt.f32 %v69_v36 }
  0xb4   :  { %v120_v38 = vpop.eup %119 }
  0xb5   :  { %v122_v39 = vpop.eup %121  ;;  %83 = vst.msk [vmem:[%s221_s1 + $0x18] sm:$0xff] %vm79_vm1, %v120_v38 }
  0xb6   :  { %81 = vst.msk [vmem:[%s221_s1 + $0x8] sm:$0xff] %vm79_vm1, %v122_v39 }
  0xb8   :  { %v124_v40 = vpop.eup %123 }
  0xb9   :  { %v126_v41 = vpop.eup %125  ;;  %85 = vst.msk [vmem:[%s221_s1 + $0x28] sm:$0xff] %vm79_vm1, %v124_v40 }
  0xba   :  { %84 = vst.msk [vmem:[%s221_s1 + $0x20] sm:$0xff] %vm79_vm1, %v126_v41 }
  0xbc   :  { %v128_v42 = vpop.eup %127 }
  0xbd   :  { %v130_v43 = vpop.eup %129  ;;  %87 = vst.msk [vmem:[%s221_s1 + $0x38] sm:$0xff] %vm79_vm1, %v128_v42 }
  0xbe   :  { %86 = vst.msk [vmem:[%s221_s1 + $0x30] sm:$0xff] %vm79_vm1, %v130_v43 }
  0xbf   :  { %92 = vsyncpa [#allocation3], 1 }

</bundles_post_ra>
